<compile_context>
chip_gen: v7x
topology: tpu7x:2x2x1
jax: 0.10.0
libtpu: 0.0.40
codegen_flags: <defaults>
</compile_context>

<pallas_src>
import jax
import jax.numpy as jnp
from jax.experimental import pallas as pl
from jax.experimental.pallas import tpu as pltpu

FEAT_IN = 21       # input features of the ODE state fed to the net
HIDDEN = 100       # hidden width
FEAT_OUT = 13      # net output features
ZERO_PREFIX = 8    # torch.zeros((B, 8)) concatenated in front
PAD = 128          # lane-padded feature width
N_LAYERS = 7
MAX_TILE_B = 2048  # max batch rows per grid step
MIN_SPLIT_B = 512  # below this, a single tile (latency path)

assert PAD - 1 >= max(HIDDEN, FEAT_IN, ZERO_PREFIX + FEAT_OUT)  # ones lane is free


def _round_up(x, m):
    return ((x + m - 1) // m) * m


def _cdiv(a, b):
    return (a + b - 1) // b


def _choose_tiling(batch):
    """Balanced batch tiles: <= MAX_TILE_B rows, 8-row quantum, >=2 tiles for
    mid/large batches so v7x's two TensorCores both get work."""
    b8 = _round_up(max(batch, 1), 8)
    if b8 < MIN_SPLIT_B:
        return b8, 1
    n_tiles = max(2, _cdiv(b8, MAX_TILE_B))
    tb = _round_up(_cdiv(b8, n_tiles), 8)
    n_tiles = _cdiv(b8, tb)
    return tb, n_tiles


def _num_chunks(tb):
    """How many independent row-chunks to interleave through the layer chain."""
    for c in (4, 2):
        if tb % c == 0 and (tb // c) % 8 == 0 and tb // c >= 64:
            return c
    return 1


def _make_kernel(tb, n_chunks):
    rows = tb // n_chunks

    def kernel(x_ref, w_ref, o_ref, h0_ref):
        """Fused 7-layer MLP: 6x (Linear + ReLU), then final Linear.

        x_ref  : [tb, 21]        f32   raw ODE state rows (this tile)
        w_ref  : [7, 128, 128]   bf16  stacked weights [in, out]; bias in row 127
        o_ref  : [tb, 128]       f32   lanes 0:8 exact zeros, lanes 8:21 = net(y)
        h0_ref : [tb, 128]       f32   scratch: lane-padded input + "ones lane"
        """
        # Build the padded layer-0 activation in VMEM:
        #   lanes 0:21   = y rows (this tile)
        #   lane  127    = 1.0  (bias "ones lane")
        #   other lanes  = 0.0
        lane = jax.lax.broadcasted_iota(jnp.int32, (tb, PAD), 1)
        h0_ref[...] = jnp.where(lane == PAD - 1, 1.0, 0.0)
        h0_ref[:, :FEAT_IN] = x_ref[...]

        # Independent row-chunks, statically unrolled layer-by-layer so the
        # MXU work of one chunk overlaps the ReLU/cast epilogue of another.
        hs = [
            h0_ref[pl.ds(c * rows, rows), :].astype(jnp.bfloat16)
            for c in range(n_chunks)
        ]
        for i in range(N_LAYERS - 1):
            w_i = w_ref[i]
            hs = [
                jnp.maximum(
                    jnp.dot(h, w_i, preferred_element_type=jnp.float32), 0.0
                ).astype(jnp.bfloat16)
                for h in hs
            ]
        # Final layer (no ReLU). Its 13 real output columns sit at lanes 8:21
        # of the padded weight, so the zero-prefix concat falls out of the
        # matmul, and the store is a full 128-lane unmasked vst.
        w_last = w_ref[N_LAYERS - 1]
        for c in range(n_chunks):
            o_ref[pl.ds(c * rows, rows), :] = jnp.dot(
                hs[c], w_last, preferred_element_type=jnp.float32)

    return kernel


def init_params(key):
    """kaiming_normal_ (fan_in, gain=sqrt(2)) weights, zero biases.

    Returns:
      w_stack: [7, 128, 128] bf16, stored [in, out], zero-padded.
               Layer 6's real columns sit at lanes 8:21 (fused zero-prefix).
               Biases (zero here) belong in row 127 ("ones lane"); hidden
               layers set w[i,127,127]=1 so the ones lane survives ReLU.
      raw_ws : list of unpadded f32 [in, out] matrices (pure-JAX reference).
    """
    dims = [FEAT_IN] + [HIDDEN] * 6 + [FEAT_OUT]
    keys = jax.random.split(key, N_LAYERS)
    w_stack = jnp.zeros((N_LAYERS, PAD, PAD), dtype=jnp.float32)
    raw_ws = []
    for i in range(N_LAYERS):
        fan_in, fan_out = dims[i], dims[i + 1]
        std = jnp.sqrt(2.0 / fan_in)
        w = jax.random.normal(keys[i], (fan_in, fan_out), dtype=jnp.float32) * std
        raw_ws.append(w)
        col0 = ZERO_PREFIX if i == N_LAYERS - 1 else 0
        w_stack = w_stack.at[i, :fan_in, col0:col0 + fan_out].set(w)
        # Trained biases would go here: w_stack[i, 127, col0:col0+fan_out] = b_i
        if i < N_LAYERS - 1:
            w_stack = w_stack.at[i, PAD - 1, PAD - 1].set(1.0)  # keep ones lane alive
    return w_stack.astype(jnp.bfloat16), raw_ws


def ode_func_forward(t, y, w_stack):
    """Equivalent of ODEFunc.forward: cat([zeros(B, 8), net(y)], dim=1).

    y: [B, 21] float32. Returns [B, 21] float32. `t` is unused (matches PyTorch).
    """
    del t
    y = jnp.asarray(y, jnp.float32)
    B = y.shape[0]
    tb, n_tiles = _choose_tiling(B)
    n_chunks = _num_chunks(tb)

    cost = pl.CostEstimate(
        flops=2 * (tb * n_tiles) * PAD * PAD * N_LAYERS,
        transcendentals=0,
        bytes_accessed=(y.size * 4 + w_stack.size * 2 + B * PAD * 4),
    )

    out = pl.pallas_call(
        _make_kernel(tb, n_chunks),
        out_shape=jax.ShapeDtypeStruct((B, PAD), jnp.float32),
        grid=(n_tiles,),
        in_specs=[
            # Raw (B, 21) f32 rows: full last dim, no host-side pad/cast.
            pl.BlockSpec((tb, FEAT_IN), lambda i: (i, 0)),
            # Stacked weights, constant index_map -> VMEM-resident across tiles.
            pl.BlockSpec((N_LAYERS, PAD, PAD), lambda i: (0, 0, 0)),
        ],
        out_specs=pl.BlockSpec((tb, PAD), lambda i: (i, 0)),
        scratch_shapes=[pltpu.VMEM((tb, PAD), jnp.float32)],
        compiler_params=pltpu.CompilerParams(
            dimension_semantics=("parallel",),
            vmem_limit_bytes=32 * 1024 * 1024,
        ),
        cost_estimate=cost,
    )(y, w_stack)

    # Zero prefix + net output are already contiguous in lanes 0:21.
    return out[:, :ZERO_PREFIX + FEAT_OUT]


def _reference_forward(y, raw_ws):
    """Pure-JAX f32 reference of ODEFunc.forward."""
    h = y
    for i, w in enumerate(raw_ws):
        h = h @ w
        if i < len(raw_ws) - 1:
            h = jnp.maximum(h, 0.0)
    return jnp.concatenate(
        [jnp.zeros((y.shape[0], ZERO_PREFIX), y.dtype), h], axis=1)


if __name__ == "__main__":
    key = jax.random.PRNGKey(0)
    k_param, k_y = jax.random.split(key)

    w_stack, raw_ws = init_params(k_param)

    B = 8
    y = jax.random.normal(k_y, (B, FEAT_IN), dtype=jnp.float32)
    t = jnp.float32(0.0)  # unused, matches the PyTorch signature

    out = jax.block_until_ready(ode_func_forward(t, y, w_stack))

    assert out.shape == (B, ZERO_PREFIX + FEAT_OUT)          # (B, 21)
    assert bool(jnp.all(out[:, :ZERO_PREFIX] == 0.0))        # exact zero prefix
    assert bool(jnp.all(jnp.isfinite(out)))

    ref = _reference_forward(y, raw_ws)
    max_err = float(jnp.max(jnp.abs(out - ref)))
    assert max_err < 0.25, f"max abs error vs f32 reference too large: {max_err}"

    print("KERNEL_OK")
</pallas_src>

<mosaic_0001>
module attributes {stable_mosaic.version = 11 : i64} {
  func.func @kernel(%arg0: i32, %arg1: memref<8x21xf32, #tpu.memory_space<vmem>>, %arg2: memref<7x128x128xbf16, #tpu.memory_space<vmem>>, %arg3: memref<8x128xf32, #tpu.memory_space<vmem>>, %arg4: memref<8x128xf32, #tpu.memory_space<vmem>>) attributes {dimension_semantics = [#tpu.dimension_semantics<parallel>], iteration_bounds = array<i64: 1>, scalar_prefetch = 0 : i64, scratch_operands = 1 : i64, tpu.core_type = #tpu.core_type<tc>, window_params = [{transform_indices = @transform_0, window_bounds = array<i64: 8, 21>}, {pipeline_mode = #tpu.pipeline_mode<synchronous>, transform_indices = @transform_1, window_bounds = array<i64: 7, 128, 128>}, {transform_indices = @transform_2, window_bounds = array<i64: 8, 128>}]} {
    %0 = tpu.iota {dimensions = array<i32: 1>} : vector<8x128xi32>
    %c127_i32 = arith.constant 127 : i32
    %1 = vector.broadcast %c127_i32 : i32 to vector<8x128xi32>
    %2 = arith.cmpi eq, %0, %1 : vector<8x128xi32>
    %cst = arith.constant 1.000000e+00 : f32
    %cst_0 = arith.constant 0.000000e+00 : f32
    %3 = vector.broadcast %cst : f32 to vector<8x128xf32>
    %4 = vector.broadcast %cst_0 : f32 to vector<8x128xf32>
    %5 = arith.select %2, %3, %4 : vector<8x128xi1>, vector<8x128xf32>
    %c0 = arith.constant 0 : index
    %c0_1 = arith.constant 0 : index
    %6 = vector.load %arg4[%c0, %c0_1] : memref<8x128xf32, #tpu.memory_space<vmem>>, vector<8x128xf32>
    tpu.vector_store %arg4[%c0, %c0_1], %5 {strides = array<i32>} : memref<8x128xf32, #tpu.memory_space<vmem>>, vector<8x128xf32>,
    %c0_2 = arith.constant 0 : index
    %c0_3 = arith.constant 0 : index
    %7 = vector.load %arg1[%c0_2, %c0_3] : memref<8x21xf32, #tpu.memory_space<vmem>>, vector<8x21xf32>
    %c0_4 = arith.constant 0 : index
    %c0_5 = arith.constant 0 : index
    %8 = vector.load %arg4[%c0_4, %c0_5] : memref<8x128xf32, #tpu.memory_space<vmem>>, vector<8x21xf32>
    tpu.vector_store %arg4[%c0_4, %c0_5], %7 {strides = array<i32>} : memref<8x128xf32, #tpu.memory_space<vmem>>, vector<8x21xf32>,
    %c0_6 = arith.constant 0 : index
    %c0_7 = arith.constant 0 : index
    %9 = vector.load %arg4[%c0_6, %c0_7] : memref<8x128xf32, #tpu.memory_space<vmem>>, vector<8x128xf32>
    %10 = arith.truncf %9 : vector<8x128xf32> to vector<8x128xbf16>
    %c0_8 = arith.constant 0 : index
    %c0_9 = arith.constant 0 : index
    %c0_10 = arith.constant 0 : index
    %11 = vector.load %arg2[%c0_8, %c0_9, %c0_10] : memref<7x128x128xbf16, #tpu.memory_space<vmem>>, vector<1x128x128xbf16>
    %12 = vector.shape_cast %11 : vector<1x128x128xbf16> to vector<128x128xbf16>
    %cst_11 = arith.constant dense<0.000000e+00> : vector<8x128xf32>
    %13 = tpu.matmul %10, %12, %cst_11 {dimension_numbers = #tpu.dot_dimension_numbers<[1], [0], [0], [1], [0, 0, 1, 1], [], []>} : vector<8x128xbf16>, vector<128x128xbf16>, vector<8x128xf32> -> vector<8x128xf32>
    %cst_12 = arith.constant 0.000000e+00 : f32
    %14 = vector.broadcast %cst_12 : f32 to vector<8x128xf32>
    %15 = arith.maximumf %13, %14 : vector<8x128xf32>
    %16 = arith.truncf %15 : vector<8x128xf32> to vector<8x128xbf16>
    %c1 = arith.constant 1 : index
    %c0_13 = arith.constant 0 : index
    %c0_14 = arith.constant 0 : index
    %17 = vector.load %arg2[%c1, %c0_13, %c0_14] : memref<7x128x128xbf16, #tpu.memory_space<vmem>>, vector<1x128x128xbf16>
    %18 = vector.shape_cast %17 : vector<1x128x128xbf16> to vector<128x128xbf16>
    %cst_15 = arith.constant dense<0.000000e+00> : vector<8x128xf32>
    %19 = tpu.matmul %16, %18, %cst_15 {dimension_numbers = #tpu.dot_dimension_numbers<[1], [0], [0], [1], [0, 0, 1, 1], [], []>} : vector<8x128xbf16>, vector<128x128xbf16>, vector<8x128xf32> -> vector<8x128xf32>
    %cst_16 = arith.constant 0.000000e+00 : f32
    %20 = vector.broadcast %cst_16 : f32 to vector<8x128xf32>
    %21 = arith.maximumf %19, %20 : vector<8x128xf32>
    %22 = arith.truncf %21 : vector<8x128xf32> to vector<8x128xbf16>
    %c2 = arith.constant 2 : index
    %c0_17 = arith.constant 0 : index
    %c0_18 = arith.constant 0 : index
    %23 = vector.load %arg2[%c2, %c0_17, %c0_18] : memref<7x128x128xbf16, #tpu.memory_space<vmem>>, vector<1x128x128xbf16>
    %24 = vector.shape_cast %23 : vector<1x128x128xbf16> to vector<128x128xbf16>
    %cst_19 = arith.constant dense<0.000000e+00> : vector<8x128xf32>
    %25 = tpu.matmul %22, %24, %cst_19 {dimension_numbers = #tpu.dot_dimension_numbers<[1], [0], [0], [1], [0, 0, 1, 1], [], []>} : vector<8x128xbf16>, vector<128x128xbf16>, vector<8x128xf32> -> vector<8x128xf32>
    %cst_20 = arith.constant 0.000000e+00 : f32
    %26 = vector.broadcast %cst_20 : f32 to vector<8x128xf32>
    %27 = arith.maximumf %25, %26 : vector<8x128xf32>
    %28 = arith.truncf %27 : vector<8x128xf32> to vector<8x128xbf16>
    %c3 = arith.constant 3 : index
    %c0_21 = arith.constant 0 : index
    %c0_22 = arith.constant 0 : index
    %29 = vector.load %arg2[%c3, %c0_21, %c0_22] : memref<7x128x128xbf16, #tpu.memory_space<vmem>>, vector<1x128x128xbf16>
    %30 = vector.shape_cast %29 : vector<1x128x128xbf16> to vector<128x128xbf16>
    %cst_23 = arith.constant dense<0.000000e+00> : vector<8x128xf32>
    %31 = tpu.matmul %28, %30, %cst_23 {dimension_numbers = #tpu.dot_dimension_numbers<[1], [0], [0], [1], [0, 0, 1, 1], [], []>} : vector<8x128xbf16>, vector<128x128xbf16>, vector<8x128xf32> -> vector<8x128xf32>
    %cst_24 = arith.constant 0.000000e+00 : f32
    %32 = vector.broadcast %cst_24 : f32 to vector<8x128xf32>
    %33 = arith.maximumf %31, %32 : vector<8x128xf32>
    %34 = arith.truncf %33 : vector<8x128xf32> to vector<8x128xbf16>
    %c4 = arith.constant 4 : index
    %c0_25 = arith.constant 0 : index
    %c0_26 = arith.constant 0 : index
    %35 = vector.load %arg2[%c4, %c0_25, %c0_26] : memref<7x128x128xbf16, #tpu.memory_space<vmem>>, vector<1x128x128xbf16>
    %36 = vector.shape_cast %35 : vector<1x128x128xbf16> to vector<128x128xbf16>
    %cst_27 = arith.constant dense<0.000000e+00> : vector<8x128xf32>
    %37 = tpu.matmul %34, %36, %cst_27 {dimension_numbers = #tpu.dot_dimension_numbers<[1], [0], [0], [1], [0, 0, 1, 1], [], []>} : vector<8x128xbf16>, vector<128x128xbf16>, vector<8x128xf32> -> vector<8x128xf32>
    %cst_28 = arith.constant 0.000000e+00 : f32
    %38 = vector.broadcast %cst_28 : f32 to vector<8x128xf32>
    %39 = arith.maximumf %37, %38 : vector<8x128xf32>
    %40 = arith.truncf %39 : vector<8x128xf32> to vector<8x128xbf16>
    %c5 = arith.constant 5 : index
    %c0_29 = arith.constant 0 : index
    %c0_30 = arith.constant 0 : index
    %41 = vector.load %arg2[%c5, %c0_29, %c0_30] : memref<7x128x128xbf16, #tpu.memory_space<vmem>>, vector<1x128x128xbf16>
    %42 = vector.shape_cast %41 : vector<1x128x128xbf16> to vector<128x128xbf16>
    %cst_31 = arith.constant dense<0.000000e+00> : vector<8x128xf32>
    %43 = tpu.matmul %40, %42, %cst_31 {dimension_numbers = #tpu.dot_dimension_numbers<[1], [0], [0], [1], [0, 0, 1, 1], [], []>} : vector<8x128xbf16>, vector<128x128xbf16>, vector<8x128xf32> -> vector<8x128xf32>
    %cst_32 = arith.constant 0.000000e+00 : f32
    %44 = vector.broadcast %cst_32 : f32 to vector<8x128xf32>
    %45 = arith.maximumf %43, %44 : vector<8x128xf32>
    %46 = arith.truncf %45 : vector<8x128xf32> to vector<8x128xbf16>
    %c6 = arith.constant 6 : index
    %c0_33 = arith.constant 0 : index
    %c0_34 = arith.constant 0 : index
    %47 = vector.load %arg2[%c6, %c0_33, %c0_34] : memref<7x128x128xbf16, #tpu.memory_space<vmem>>, vector<1x128x128xbf16>
    %48 = vector.shape_cast %47 : vector<1x128x128xbf16> to vector<128x128xbf16>
    %cst_35 = arith.constant dense<0.000000e+00> : vector<8x128xf32>
    %49 = tpu.matmul %46, %48, %cst_35 {dimension_numbers = #tpu.dot_dimension_numbers<[1], [0], [0], [1], [0, 0, 1, 1], [], []>} : vector<8x128xbf16>, vector<128x128xbf16>, vector<8x128xf32> -> vector<8x128xf32>
    %c0_36 = arith.constant 0 : index
    %c0_37 = arith.constant 0 : index
    %50 = vector.load %arg3[%c0_36, %c0_37] : memref<8x128xf32, #tpu.memory_space<vmem>>, vector<8x128xf32>
    tpu.vector_store %arg3[%c0_36, %c0_37], %49 {strides = array<i32>} : memref<8x128xf32, #tpu.memory_space<vmem>>, vector<8x128xf32>,
    return
  }
  func.func @transform_0(%arg0: i32) -> (i32, i32) {
    %c0_i32 = arith.constant 0 : i32
    %c0_i32_0 = arith.constant 0 : i32
    return %arg0, %c0_i32 : i32, i32
  }
  func.func @transform_1(%arg0: i32) -> (i32, i32, i32) {
    %c0_i32 = arith.constant 0 : i32
    %c0_i32_0 = arith.constant 0 : i32
    %c0_i32_1 = arith.constant 0 : i32
    %c0_i32_2 = arith.constant 0 : i32
    return %c0_i32, %c0_i32_0, %c0_i32_1 : i32, i32, i32
  }
  func.func @transform_2(%arg0: i32) -> (i32, i32) {
    %c0_i32 = arith.constant 0 : i32
    %c0_i32_0 = arith.constant 0 : i32
    return %arg0, %c0_i32 : i32, i32
  }
}

</mosaic_0001>

<bundles_post_ra>
// kernel: tpu_custom_call.1
= control target key start
LH: loop header
LB: loop body
LE: loop exit
PB: predicated region body
PF: predicated region fallthrough
CT: control target
= control target key end

     0   :  { %7 = vsyncpa [#allocation4], 0  ;;  %s1342_s0 = inlined_call_operand.hbm [shape: f32[8,21], index: 0, kind: input, shape index: {}]   ;;  %s1343_s1 = inlined_call_operand.hbm [shape: bf16[7,128,128], index: 1, kind: input, shape index: {}]   ;;  %s1344_s2 = inlined_call_operand.hbm [shape: f32[8,128], index: 2, kind: output, shape index: {}]  }
   0x1   :  { %8 = vsyncpa [#allocation7], 0 }
   0x2   :  { %9 = vsyncpa [#allocation5], 0  ;;  %s1206_s9 = smov [#allocation3]   ;;  %s1207_s11 = smov [#allocation6]  }
   0x3   :  { %s16_s10 = sshll.u32 %s1206_s9, 4  ;;  %s25_s12 = sshll.u32 %s1207_s11, 4  ;;  %s17_s10 = int_to_ptr.vmem [resolvable:$true] %s16_s10  ;;  %s1228_s12 = int_to_ptr.vmem [resolvable:$true] %s25_s12 }
   0x4   :  { %s1134_s15 = scalar_lea.hbm %s1342_s0, 128 }
   0x5   :  { %p1135_p0 = scmp.ne.s32.totalorder %s1342_s0, %s1134_s15  ;;  %p1138_p1 = scmp.lt.u32.totalorder %s1134_s15, %s1342_s0 }
   0x7   :  { %p1140_p2 = pnand %p1138_p1, %p1135_p0 }
   0x9   :  { %1143 = shalt.err (!%p1140_p2)
}
   0xa   :  { %s1144_s20 = scalar_lea.vmem %s17_s10, 128  ;;  %p1149_p4 = scmp.lt.s32.totalorder %s17_s10, %s17_s10 }
   0xb   :  { %p1145_p3 = scmp.ne.s32.totalorder %s17_s10, %s1144_s20  ;;  %p1150_p5 = scmp.lt.s32.totalorder %s1144_s20, %s1144_s20 }
   0xd   :  { %p1151_p6 = por %p1150_p5, %p1149_p4 }
   0xf   :  { %p1152_p7 = pnand %p1151_p6, %p1145_p3 }
  0x11   :  { %1155 = shalt.err (!%p1152_p7)
}
  0x12   :  { %19 = dma.hbm_to_vmem [thread:$0]  %s1342_s0, 128, %s17_s10, [#allocation4]  }
  0x13   :  { %s1156_s25 = scalar_lea.hbm %s1343_s1, 7168 }
  0x14   :  { %p1157_p8 = scmp.ne.s32.totalorder %s1343_s1, %s1156_s25  ;;  %p1160_p9 = scmp.lt.u32.totalorder %s1156_s25, %s1343_s1 }
  0x16   :  { %p1162_p10 = pnand %p1160_p9, %p1157_p8 }
  0x18   :  { %1165 = shalt.err (!%p1162_p10)
}
  0x19   :  { %s1166_s30 = scalar_lea.vmem %s1228_s12, 7168  ;;  %p1171_p12 = scmp.lt.s32.totalorder %s1228_s12, %s1228_s12 }
  0x1a   :  { %p1167_p11 = scmp.ne.s32.totalorder %s1228_s12, %s1166_s30  ;;  %p1172_p13 = scmp.lt.s32.totalorder %s1166_s30, %s1166_s30 }
  0x1c   :  { %p1173_p0 = por %p1172_p13, %p1171_p12 }
  0x1e   :  { %p1174_p1 = pnand %p1173_p0, %p1167_p11 }
  0x20   :  { %1177 = shalt.err (!%p1174_p1)
}
  0x21   :  { %s1208_s0 = smov 64   ;;  %s1209_s3 = smov 4  }
  0x22   :  { %31 = dma.hbm_to_vmem [thread:$0]  %s1343_s1, 7168, %s1228_s12, [#allocation7], %s1208_s0, %s1208_s0, %s1209_s3  }
  0x23   :  { %1200 = dma.done.wait [#allocation4], 128  }
  0x24   :  { %1201 = vsyncadd [#allocation4], 4294967168 }
  0x25   :  { %1202 = dma.done.wait [#allocation7], 7168  }
  0x26   :  { %1203 = vsyncadd [#allocation7], 4294960128  ;;  %v39_v0 = vlaneseq  ;;  %v1210_v1 = vmov 0.0   ;;  %vm1211_vm0 = vmmov 0   ;;  %v1078_v4 = vld [vmem:[#allocation6] sm:$0xff]   ;;  %v1079_v5 = vld [vmem:[#allocation6 + $0x8] sm:$0xff]  }
  0x27   :  { %931 = vmatprep.subr.bf16.mxu0 %v1210_v1  ;;  %947 = vmatprep.mubr.msk.bf16.mxu0 %vm1211_vm0, %v1210_v1  ;;  %v1080_v6 = vld [vmem:[#allocation6 + $0x10] sm:$0xff]   ;;  %vm45_vm2 = vcmask 171008   ;;  %v44_v7 = vld [vmem:[#allocation3] sm:$0xff]  ;;  %v1086_v8 = vld [vmem:[#allocation6 + $0x40] sm:$0xff]   ;;  %s1212_s1 = smov [#allocation8]  }
  0x28   :  { %v40_v2 = vand.u32 127, %v39_v0  ;;  %951 = vmatprep.subr.bf16.mxu1 %v1210_v1  ;;  %967 = vmatprep.mubr.msk.bf16.mxu1 %vm1211_vm0, %v1210_v1  ;;  %v1081_v9 = vld [vmem:[#allocation6 + $0x18] sm:$0xff]   ;;  %v1087_v10 = vld [vmem:[#allocation6 + $0x48] sm:$0xff]   ;;  %v1082_v11 = vld [vmem:[#allocation6 + $0x20] sm:$0xff]   ;;  %s802_s6 = sshll.u32 %s1212_s1, 4  ;;  %s803_s6 = int_to_ptr.vmem [resolvable:$true] %s802_s6 }
  0x29   :  { %932 = vmatpush3.bf16.msra.mxu0 %v1078_v4  ;;  %952 = vmatpush3.bf16.msra.mxu1 %v1086_v8  ;;  %v1088_v12 = vld [vmem:[#allocation6 + $0x50] sm:$0xff]   ;;  %v1083_v13 = vld [vmem:[#allocation6 + $0x28] sm:$0xff]   ;;  %v1089_v14 = vld [vmem:[#allocation6 + $0x58] sm:$0xff]   ;;  %s1178_s7 = scalar_lea.vmem %s803_s6, 128  ;;  %p1183_p3 = scmp.lt.s32.totalorder %s803_s6, %s803_s6 }
  0x2a   :  { %vm41_vm1 = vcmp.eq.s32.totalorder %v40_v2, 127  ;;  %933 = vmatprep.subr.bf16.mxu0 %v1210_v1  ;;  %953 = vmatprep.subr.bf16.mxu1 %v1210_v1  ;;  %v1084_v15 = vld [vmem:[#allocation6 + $0x30] sm:$0xff]   ;;  %v1090_v16 = vld [vmem:[#allocation6 + $0x60] sm:$0xff]   ;;  %v1085_v17 = vld [vmem:[#allocation6 + $0x38] sm:$0xff]   ;;  %p1179_p2 = scmp.ne.s32.totalorder %s803_s6, %s1178_s7  ;;  %p1184_p4 = scmp.lt.s32.totalorder %s1178_s7, %s1178_s7 }
  0x2b   :  { %v42_v3 = vsel %vm41_vm1, 1.0, %v1210_v1  ;;  %v1091_v19 = vld [vmem:[#allocation6 + $0x68] sm:$0xff]   ;;  %v1092_v21 = vld [vmem:[#allocation6 + $0x70] sm:$0xff]   ;;  %v1093_v22 = vld [vmem:[#allocation6 + $0x78] sm:$0xff]  }
  0x2c   :  { %43 = vst [vmem:[#allocation2] sm:$0xff] %v42_v3  ;;  %v1094_v23 = vld [vmem:[#allocation6 + $0x80] sm:$0xff]   ;;  %v1095_v24 = vld [vmem:[#allocation6 + $0x88] sm:$0xff]   ;;  %v1096_v25 = vld [vmem:[#allocation6 + $0x90] sm:$0xff]   ;;  %p1185_p5 = por %p1184_p4, %p1183_p3 }
  0x2d   :  { %934 = vmatpush3.bf16.msra.mxu0 %v1079_v5  ;;  %46 = vst.msk [vmem:[#allocation2] sm:$0xff] %vm45_vm2, %v44_v7  ;;  %954 = vmatpush3.bf16.msra.mxu1 %v1087_v10  ;;  %v1097_v26 = vld [vmem:[#allocation6 + $0x98] sm:$0xff]   ;;  %v1098_v27 = vld [vmem:[#allocation6 + $0xa0] sm:$0xff]   ;;  %v1099_v28 = vld [vmem:[#allocation6 + $0xa8] sm:$0xff]  }
  0x2e   :  { %935 = vmatprep.subr.bf16.mxu0 %v1210_v1  ;;  %955 = vmatprep.subr.bf16.mxu1 %v1210_v1  ;;  %v1100_v29 = vld [vmem:[#allocation6 + $0xb0] sm:$0xff]   ;;  %v1101_v36 = vld [vmem:[#allocation6 + $0xb8] sm:$0xff]   ;;  %v1102_v37 = vld [vmem:[#allocation6 + $0xc0] sm:$0xff]   ;;  %p1186_p6 = pnand %p1185_p5, %p1179_p2 }
  0x2f   :  { %v1103_v38 = vld [vmem:[#allocation6 + $0xc8] sm:$0xff]   ;;  %v1104_v39 = vld [vmem:[#allocation6 + $0xd0] sm:$0xff]   ;;  %v1105_v40 = vld [vmem:[#allocation6 + $0xd8] sm:$0xff]  }
  0x30   :  { %v1106_v41 = vld [vmem:[#allocation6 + $0xe0] sm:$0xff]   ;;  %v1107_v42 = vld [vmem:[#allocation6 + $0xe8] sm:$0xff]   ;;  %v1108_v43 = vld [vmem:[#allocation6 + $0xf0] sm:$0xff]  }
  0x31   :  { %936 = vmatpush3.bf16.msra.mxu0 %v1080_v6  ;;  %956 = vmatpush3.bf16.msra.mxu1 %v1088_v12  ;;  %v1109_v50 = vld [vmem:[#allocation6 + $0xf8] sm:$0xff]   ;;  %v1110_v51 = vld [vmem:[#allocation6 + $0x100] sm:$0xff]   ;;  %v1111_v52 = vld [vmem:[#allocation6 + $0x108] sm:$0xff]  }
  0x32   :  { %937 = vmatprep.subr.bf16.mxu0 %v1210_v1  ;;  %957 = vmatprep.subr.bf16.mxu1 %v1210_v1  ;;  %v1112_v53 = vld [vmem:[#allocation6 + $0x110] sm:$0xff]   ;;  %v1113_v54 = vld [vmem:[#allocation6 + $0x118] sm:$0xff]   ;;  %v1114_v55 = vld [vmem:[#allocation6 + $0x120] sm:$0xff]  }
  0x33   :  { %v1115_v56 = vld [vmem:[#allocation6 + $0x128] sm:$0xff]   ;;  %v1116_v57 = vld [vmem:[#allocation6 + $0x130] sm:$0xff]   ;;  %v1117_v0 = vld [vmem:[#allocation6 + $0x138] sm:$0xff]  }
  0x34   :  { %v47_v18 = vld [vmem:[#allocation2] sm:$0xff]  ;;  %v1118_v2 = vld [vmem:[#allocation6 + $0x140] sm:$0xff]   ;;  %v1119_v3 = vld [vmem:[#allocation6 + $0x148] sm:$0xff]  }
  0x35   :  { %938 = vmatpush3.bf16.msra.mxu0 %v1081_v9  ;;  %958 = vmatpush3.bf16.msra.mxu1 %v1089_v14  ;;  %v48_v20 = vpack.c.bf16 %v47_v18, %v47_v18  ;;  %v1120_v4 = vld [vmem:[#allocation6 + $0x150] sm:$0xff]   ;;  %v1121_v5 = vld [vmem:[#allocation6 + $0x158] sm:$0xff]   ;;  %v1122_v6 = vld [vmem:[#allocation6 + $0x160] sm:$0xff]  }
  0x36   :  { %939 = vmatprep.subr.bf16.mxu0 %v1210_v1  ;;  %959 = vmatprep.subr.bf16.mxu1 %v1210_v1  ;;  %v1123_v7 = vld [vmem:[#allocation6 + $0x168] sm:$0xff]   ;;  %v1124_v8 = vld [vmem:[#allocation6 + $0x170] sm:$0xff]  }
  0x37   :  { %v1128_v18 = vld [vmem:[#allocation6 + $0x190] sm:$0xff]  }
  0x39   :  { %940 = vmatpush3.bf16.msra.mxu0 %v1082_v11  ;;  %960 = vmatpush3.bf16.msra.mxu1 %v1090_v16  ;;  %v1126_v16 = vld [vmem:[#allocation6 + $0x180] sm:$0xff]  }
  0x3a   :  { %941 = vmatprep.subr.bf16.mxu0 %v1210_v1  ;;  %961 = vmatprep.subr.bf16.mxu1 %v1210_v1 }
  0x3d   :  { %942 = vmatpush3.bf16.msra.mxu0 %v1083_v13  ;;  %962 = vmatpush3.bf16.msra.mxu1 %v1091_v19  ;;  %v1129_v19 = vld [vmem:[#allocation6 + $0x198] sm:$0xff]  }
  0x3e   :  { %943 = vmatprep.subr.bf16.mxu0 %v1210_v1  ;;  %963 = vmatprep.subr.bf16.mxu1 %v1210_v1 }
  0x41   :  { %944 = vmatpush3.bf16.msra.mxu0 %v1084_v15  ;;  %964 = vmatpush3.bf16.msra.mxu1 %v1092_v21  ;;  %v1125_v15 = vld [vmem:[#allocation6 + $0x178] sm:$0xff]   ;;  %v1131_v21 = vld [vmem:[#allocation6 + $0x1a8] sm:$0xff]  }
  0x42   :  { %945 = vmatprep.subr.bf16.mxu0 %v1210_v1  ;;  %965 = vmatprep.subr.bf16.mxu1 %v1210_v1 }
  0x45   :  { %946 = vmatpush3.bf16.msra.mxu0 %v1085_v17  ;;  %966 = vmatpush3.bf16.msra.mxu1 %v1093_v22  ;;  %v1127_v17 = vld [vmem:[#allocation6 + $0x188] sm:$0xff]   ;;  %v1132_v22 = vld [vmem:[#allocation6 + $0x1b0] sm:$0xff]  }
  0x46   :  { %971 = vmatprep.subr.bf16.mxu0 %v1210_v1  ;;  %991 = vmatprep.subr.bf16.mxu1 %v1210_v1 }
  0x48   :  { %948 = vmatmul.mubr.bf16.vlgmr.msra.gmra.mrb[0].mxu0 %v48_v20  ;;  %v1130_v20 = vld [vmem:[#allocation6 + $0x1a0] sm:$0xff]  }
  0x49   :  { %987 = vmatprep.mubr.msk.bf16.mxu0 %vm1211_vm0, %v1210_v1  ;;  %972 = vmatpush3.bf16.msra.mxu0 %v1094_v23 }
  0x4a   :  { %973 = vmatprep.subr.bf16.mxu0 %v1210_v1 }
  0x4d   :  { %974 = vmatpush3.bf16.msra.mxu0 %v1095_v24 }
  0x4e   :  { %975 = vmatprep.subr.bf16.mxu0 %v1210_v1 }
  0x51   :  { %976 = vmatpush3.bf16.msra.mxu0 %v1096_v25 }
  0x52   :  { %977 = vmatprep.subr.bf16.mxu0 %v1210_v1 }
  0x55   :  { %978 = vmatpush3.bf16.msra.mxu0 %v1097_v26 }
  0x56   :  { %979 = vmatprep.subr.bf16.mxu0 %v1210_v1 }
  0x59   :  { %980 = vmatpush3.bf16.msra.mxu0 %v1098_v27 }
  0x5a   :  { %981 = vmatprep.subr.bf16.mxu0 %v1210_v1 }
  0x5d   :  { %982 = vmatpush3.bf16.msra.mxu0 %v1099_v28 }
  0x5e   :  { %983 = vmatprep.subr.bf16.mxu0 %v1210_v1 }
  0x61   :  { %984 = vmatpush3.bf16.msra.mxu0 %v1100_v29  ;;  %v1133_v29 = vld [vmem:[#allocation6 + $0x1b8] sm:$0xff]  }
  0x62   :  { %985 = vmatprep.subr.bf16.mxu0 %v1210_v1 }
  0x65   :  { %986 = vmatpush3.bf16.msra.mxu0 %v1101_v36 }
  0x66   :  { %1011 = vmatprep.subr.bf16.mxu0 %v1210_v1 }
 0x11b   :  { %v147_v30 = vpop.f32.mrb[0].mxu0 }
 0x11c   :  { %v153_v31 = vmax.f32 %v147_v30, 0.0  ;;  %v949_v32 = vpop.f32.mrb[1].mxu0 }
 0x11d   :  { %v150_v33 = vpop.f32.mrb[2].mxu0 }
 0x11e   :  { %v154_v34 = vpack.c.bf16 %v153_v31, %v153_v31  ;;  %v950_v35 = vpop.f32.mrb[3].mxu0 }
 0x120   :  { %968 = vmatmul.mubr.bf16.vlgmr.msra.gmra.mrb[0].mxu1 %v154_v34 }
 0x121   :  { %1007 = vmatprep.mubr.msk.bf16.mxu1 %vm1211_vm0, %v1210_v1  ;;  %992 = vmatpush3.bf16.msra.mxu1 %v1102_v37 }
 0x122   :  { %993 = vmatprep.subr.bf16.mxu1 %v1210_v1 }
 0x125   :  { %994 = vmatpush3.bf16.msra.mxu1 %v1103_v38 }
 0x126   :  { %995 = vmatprep.subr.bf16.mxu1 %v1210_v1 }
 0x129   :  { %996 = vmatpush3.bf16.msra.mxu1 %v1104_v39 }
 0x12a   :  { %997 = vmatprep.subr.bf16.mxu1 %v1210_v1 }
 0x12d   :  { %998 = vmatpush3.bf16.msra.mxu1 %v1105_v40 }
 0x12e   :  { %999 = vmatprep.subr.bf16.mxu1 %v1210_v1 }
 0x131   :  { %1000 = vmatpush3.bf16.msra.mxu1 %v1106_v41 }
 0x132   :  { %1001 = vmatprep.subr.bf16.mxu1 %v1210_v1 }
 0x135   :  { %1002 = vmatpush3.bf16.msra.mxu1 %v1107_v42 }
 0x136   :  { %1003 = vmatprep.subr.bf16.mxu1 %v1210_v1 }
 0x139   :  { %1004 = vmatpush3.bf16.msra.mxu1 %v1108_v43 }
 0x13a   :  { %1005 = vmatprep.subr.bf16.mxu1 %v1210_v1 }
 0x13d   :  { %1006 = vmatpush3.bf16.msra.mxu1 %v1109_v50 }
 0x13e   :  { %1031 = vmatprep.subr.bf16.mxu1 %v1210_v1 }
 0x1f3   :  { %v254_v44 = vpop.f32.mrb[0].mxu1 }
 0x1f4   :  { %v260_v45 = vmax.f32 %v254_v44, 0.0  ;;  %v969_v46 = vpop.f32.mrb[1].mxu1 }
 0x1f5   :  { %v257_v47 = vpop.f32.mrb[2].mxu1 }
 0x1f6   :  { %v261_v48 = vpack.c.bf16 %v260_v45, %v260_v45  ;;  %v970_v49 = vpop.f32.mrb[3].mxu1 }
 0x1f8   :  { %988 = vmatmul.mubr.bf16.vlgmr.msra.gmra.mrb[4].mxu0 %v261_v48 }
 0x1f9   :  { %1027 = vmatprep.mubr.msk.bf16.mxu0 %vm1211_vm0, %v1210_v1  ;;  %1012 = vmatpush3.bf16.msra.mxu0 %v1110_v51 }
 0x1fa   :  { %1013 = vmatprep.subr.bf16.mxu0 %v1210_v1 }
 0x1fd   :  { %1014 = vmatpush3.bf16.msra.mxu0 %v1111_v52 }
 0x1fe   :  { %1015 = vmatprep.subr.bf16.mxu0 %v1210_v1 }
 0x201   :  { %1016 = vmatpush3.bf16.msra.mxu0 %v1112_v53 }
 0x202   :  { %1017 = vmatprep.subr.bf16.mxu0 %v1210_v1 }
 0x205   :  { %1018 = vmatpush3.bf16.msra.mxu0 %v1113_v54 }
 0x206   :  { %1019 = vmatprep.subr.bf16.mxu0 %v1210_v1 }
 0x209   :  { %1020 = vmatpush3.bf16.msra.mxu0 %v1114_v55 }
 0x20a   :  { %1021 = vmatprep.subr.bf16.mxu0 %v1210_v1 }
 0x20d   :  { %1022 = vmatpush3.bf16.msra.mxu0 %v1115_v56 }
 0x20e   :  { %1023 = vmatprep.subr.bf16.mxu0 %v1210_v1 }
 0x211   :  { %1024 = vmatpush3.bf16.msra.mxu0 %v1116_v57 }
 0x212   :  { %1025 = vmatprep.subr.bf16.mxu0 %v1210_v1 }
 0x215   :  { %1026 = vmatpush3.bf16.msra.mxu0 %v1117_v0 }
 0x216   :  { %1051 = vmatprep.subr.bf16.mxu0 %v1210_v1 }
 0x2cb   :  { %v361_v58 = vpop.f32.mrb[4].mxu0 }
 0x2cc   :  { %v367_v59 = vmax.f32 %v361_v58, 0.0  ;;  %v989_v60 = vpop.f32.mrb[5].mxu0 }
 0x2cd   :  { %v364_v61 = vpop.f32.mrb[6].mxu0 }
 0x2ce   :  { %v368_v62 = vpack.c.bf16 %v367_v59, %v367_v59  ;;  %v990_v63 = vpop.f32.mrb[7].mxu0 }
 0x2d0   :  { %1008 = vmatmul.mubr.bf16.vlgmr.msra.gmra.mrb[4].mxu1 %v368_v62 }
 0x2d1   :  { %1047 = vmatprep.mubr.msk.bf16.mxu1 %vm1211_vm0, %v1210_v1  ;;  %1032 = vmatpush3.bf16.msra.mxu1 %v1118_v2 }
 0x2d2   :  { %1033 = vmatprep.subr.bf16.mxu1 %v1210_v1 }
 0x2d5   :  { %1034 = vmatpush3.bf16.msra.mxu1 %v1119_v3 }
 0x2d6   :  { %1035 = vmatprep.subr.bf16.mxu1 %v1210_v1 }
 0x2d9   :  { %1036 = vmatpush3.bf16.msra.mxu1 %v1120_v4 }
 0x2da   :  { %1037 = vmatprep.subr.bf16.mxu1 %v1210_v1 }
 0x2dd   :  { %1038 = vmatpush3.bf16.msra.mxu1 %v1121_v5 }
 0x2de   :  { %1039 = vmatprep.subr.bf16.mxu1 %v1210_v1 }
 0x2e1   :  { %1040 = vmatpush3.bf16.msra.mxu1 %v1122_v6 }
 0x2e2   :  { %1041 = vmatprep.subr.bf16.mxu1 %v1210_v1 }
 0x2e5   :  { %1042 = vmatpush3.bf16.msra.mxu1 %v1123_v7 }
 0x2e6   :  { %1043 = vmatprep.subr.bf16.mxu1 %v1210_v1 }
 0x2e9   :  { %1044 = vmatpush3.bf16.msra.mxu1 %v1124_v8 }
 0x2ea   :  { %1045 = vmatprep.subr.bf16.mxu1 %v1210_v1 }
 0x2ed   :  { %1046 = vmatpush3.bf16.msra.mxu1 %v1125_v15 }
 0x3a3   :  { %v468_v9 = vpop.f32.mrb[4].mxu1 }
 0x3a4   :  { %v474_v10 = vmax.f32 %v468_v9, 0.0  ;;  %v1009_v11 = vpop.f32.mrb[5].mxu1 }
 0x3a5   :  { %v471_v12 = vpop.f32.mrb[6].mxu1 }
 0x3a6   :  { %v475_v13 = vpack.c.bf16 %v474_v10, %v474_v10  ;;  %v1010_v14 = vpop.f32.mrb[7].mxu1 }
 0x3a8   :  { %1028 = vmatmul.mubr.bf16.vlgmr.msra.gmra.mrb[8].mxu0 %v475_v13 }
 0x3a9   :  { %1067 = vmatprep.mubr.msk.bf16.mxu0 %vm1211_vm0, %v1210_v1  ;;  %1052 = vmatpush3.bf16.msra.mxu0 %v1126_v16 }
 0x3aa   :  { %1053 = vmatprep.subr.bf16.mxu0 %v1210_v1 }
 0x3ad   :  { %1054 = vmatpush3.bf16.msra.mxu0 %v1127_v17 }
 0x3ae   :  { %1055 = vmatprep.subr.bf16.mxu0 %v1210_v1 }
 0x3b1   :  { %1056 = vmatpush3.bf16.msra.mxu0 %v1128_v18 }
 0x3b2   :  { %1057 = vmatprep.subr.bf16.mxu0 %v1210_v1 }
 0x3b5   :  { %1058 = vmatpush3.bf16.msra.mxu0 %v1129_v19 }
 0x3b6   :  { %1059 = vmatprep.subr.bf16.mxu0 %v1210_v1 }
 0x3b9   :  { %1060 = vmatpush3.bf16.msra.mxu0 %v1130_v20 }
 0x3ba   :  { %1061 = vmatprep.subr.bf16.mxu0 %v1210_v1 }
 0x3bd   :  { %1062 = vmatpush3.bf16.msra.mxu0 %v1131_v21 }
 0x3be   :  { %1063 = vmatprep.subr.bf16.mxu0 %v1210_v1 }
 0x3c1   :  { %1064 = vmatpush3.bf16.msra.mxu0 %v1132_v22 }
 0x3c2   :  { %1065 = vmatprep.subr.bf16.mxu0 %v1210_v1 }
 0x3c5   :  { %1066 = vmatpush3.bf16.msra.mxu0 %v1133_v29 }
 0x47b   :  { %v575_v23 = vpop.f32.mrb[8].mxu0 }
 0x47c   :  { %v581_v24 = vmax.f32 %v575_v23, 0.0  ;;  %v1029_v25 = vpop.f32.mrb[9].mxu0 }
 0x47d   :  { %v578_v26 = vpop.f32.mrb[10].mxu0 }
 0x47e   :  { %v582_v27 = vpack.c.bf16 %v581_v24, %v581_v24  ;;  %v1030_v28 = vpop.f32.mrb[11].mxu0 }
 0x480   :  { %1048 = vmatmul.mubr.bf16.vlgmr.msra.gmra.mrb[8].mxu1 %v582_v27 }
 0x553   :  { %v682_v30 = vpop.f32.mrb[8].mxu1 }
 0x554   :  { %v688_v31 = vmax.f32 %v682_v30, 0.0  ;;  %v1049_v32 = vpop.f32.mrb[9].mxu1 }
 0x555   :  { %v685_v33 = vpop.f32.mrb[10].mxu1 }
 0x556   :  { %v689_v34 = vpack.c.bf16 %v688_v31, %v688_v31  ;;  %v1050_v35 = vpop.f32.mrb[11].mxu1 }
 0x558   :  { %1068 = vmatmul.mubr.bf16.vlgmr.msra.gmra.mrb[12].mxu0 %v689_v34 }
 0x62b   :  { %v789_v1 = vpop.f32.mrb[12].mxu0 }
 0x62c   :  { %795 = vst [vmem:[#allocation8] sm:$0xff] %v789_v1  ;;  %v1069_v36 = vpop.f32.mrb[13].mxu0 }
 0x62d   :  { %v792_v37 = vpop.f32.mrb[14].mxu0 }
 0x62e   :  { %1189 = shalt.err (!%p1186_p6)
}
 0x62f   :  { %s1190_s10 = scalar_lea.hbm %s1344_s2, 128 }
 0x630   :  { %p1191_p7 = scmp.ne.s32.totalorder %s1344_s2, %s1190_s10  ;;  %p1194_p8 = scmp.lt.u32.totalorder %s1190_s10, %s1344_s2 }
 0x632   :  { %p1196_p9 = pnand %p1194_p8, %p1191_p7 }
 0x634   :  { %1199 = shalt.err (!%p1196_p9)
}
 0x635   :  { %805 = dma.vmem_to_hbm [thread:$0]  %s803_s6, 128, %s1344_s2, [#allocation5]   ;;  %v1070_v38 = vpop.f32.mrb[15].mxu0 }
 0x636   :  { %1204 = dma.done.wait [#allocation5], 128  }
 0x637   :  { %1205 = vsyncadd [#allocation5], 4294967168 }
 0x638   :  { %809 = vsyncpa [#allocation4], 1 }
 0x639   :  { %810 = vsyncpa [#allocation7], 1 }
 0x63a   :  { %811 = vsyncpa [#allocation5], 1 }

</bundles_post_ra>
